<compile_context>
chip_gen: v5e
topology: v5e:2x2
jax: 0.10.0
libtpu: 0.0.40
codegen_flags: <defaults>
</compile_context>

<pallas_src>
import functools

import jax
import jax.numpy as jnp
from jax.experimental import pallas as pl
from jax.experimental.pallas import tpu as pltpu


# ----------------------------- Pallas kernels ------------------------------ #

def _matmul_bias_kernel(cols_ref, w_ref, sh_ref, o_ref, *, relu):
    """out = relu?(cols @ W_eff + shift_eff)   (bias & BN folded into W/shift)."""
    acc = jnp.dot(cols_ref[...], w_ref[...], preferred_element_type=jnp.float32)
    y = acc + sh_ref[...]
    if relu:
        y = jnp.maximum(y, 0.0)
    o_ref[...] = y.astype(o_ref.dtype)


def _matmul_add_res_relu_kernel(cols_ref, w_ref, res_ref, sh_ref, o_ref):
    """out = relu(cols @ W_eff + residual + shift_eff)   (identity shortcut)."""
    acc = jnp.dot(cols_ref[...], w_ref[...], preferred_element_type=jnp.float32)
    y = acc + res_ref[...].astype(jnp.float32) + sh_ref[...]
    o_ref[...] = jnp.maximum(y, 0.0).astype(o_ref.dtype)


# ----------------------------- tiling helpers ------------------------------ #

def _round_up(x, m):
    return ((x + m - 1) // m) * m


def _round_down(x, m):
    return (x // m) * m


def _cdiv(a, b):
    return -(-a // b)


def _device_vmem_bytes():
    """Per-TensorCore VMEM capacity; conservative (v7x) fallback."""
    try:
        info = pltpu.get_tpu_info()
        v = getattr(info, "vmem_capacity_bytes", None)
        if v:
            return int(v)
    except Exception:
        pass
    return 64 * 1024 * 1024


def _choose_tiles(M, K, Npad, *, has_res, budget):
    """Pick (tm, tn, Mpad): resident weights (single N tile) when they fit,
    biggest 16-aligned M tile that fits the budget, even M-tile count."""
    res_elems = 2 if has_res else 0  # bf16 residual bytes per row per lane

    # --- N tile: make weights grid-invariant if their double-buffer fits. ---
    tn = 128
    for cand in (Npad, 2048, 1024, 512, 256, 128):
        if cand <= Npad and Npad % cand == 0 and 2 * K * cand * 2 <= budget // 2:
            tn = cand
            break

    # --- M tile: exact double-buffer accounting. ---
    m_cap = 1024 if budget >= 64 * 1024 * 1024 else 512
    fixed = 2 * K * tn * 2 + 2 * tn * 4              # weights + shift (2-deep)
    per_row = 2 * K * 2 + 2 * tn * 2 + 2 * tn * res_elems  # cols + out (+ res)
    tm_fit = max(16, _round_down((budget - fixed) // max(per_row, 1), 16))
    tm = min(_round_up(M, 16), m_cap, tm_fit)
    tm = max(tm, 16)

    Mpad = _round_up(M, tm)
    mtiles = Mpad // tm

    # >= 2 M tiles so the "parallel" axis can be shared across TensorCores.
    if mtiles < 2 and M >= 32:
        tm = _round_up(_cdiv(M, 2), 16)
        Mpad = _round_up(M, tm)
        mtiles = Mpad // tm

    # Even M-tile count keeps v7x's two TensorCores balanced (no-op on v5e/v6e).
    if mtiles > 1 and mtiles % 2 == 1:
        tm_e = _round_up(_cdiv(M, mtiles + 1), 16)
        if tm_e >= 16:
            tm = tm_e
            Mpad = _round_up(M, tm)

    return tm, tn, Mpad


def _vmem_limit(tm, tn, K, *, has_res, budget):
    """Exact double-buffer sum for the actual BlockSpecs + ~25% margin."""
    need = (2 * tm * K * 2        # cols  (bf16, 2-deep)
            + 2 * K * tn * 2      # weights (bf16, 2-deep)
            + 2 * 1 * tn * 4      # shift (f32, 2-deep)
            + 2 * tm * tn * 2)    # output (bf16, 2-deep)
    if has_res:
        need += 2 * tm * tn * 2   # residual (bf16, 2-deep)
    limit = max(16 * 1024 * 1024, int(need * 1.25) + (2 << 20))
    return int(min(limit, budget))


def _pad_n(a, Npad):
    n = a.shape[-1]
    if n == Npad:
        return a
    return jnp.pad(a, ((0, 0), (0, Npad - n)))


# ----------------------------- fused conv call ----------------------------- #

def _fused_matmul(cols, w_eff, shift, *, relu=True, residual=None):
    """One fused conv(+shortcut)(+ReLU) as a tiled Pallas matmul.

    cols:(M,K) bf16, w_eff:(K,Npad) bf16, shift:(1,Npad) f32,
    residual:(M,Npad) bf16 (identity shortcut) or None.
    Returns (Mpad, Npad) bfloat16.
    """
    M, K = cols.shape
    Npad = w_eff.shape[1]
    has_res = residual is not None

    budget = int(0.70 * _device_vmem_bytes())
    tm, tn, Mpad = _choose_tiles(M, K, Npad, has_res=has_res, budget=budget)
    mtiles, ntiles = Mpad // tm, Npad // tn
    grid = (mtiles, ntiles)

    def pad_rows(a):
        return a if a.shape[0] == Mpad else jnp.pad(a, ((0, Mpad - a.shape[0]), (0, 0)))

    cols = pad_rows(cols)

    cols_spec = pl.BlockSpec((tm, K), lambda i, j: (i, 0))
    w_spec = pl.BlockSpec((K, tn), lambda i, j: (0, j))
    sh_spec = pl.BlockSpec((1, tn), lambda i, j: (0, j))
    out_spec = pl.BlockSpec((tm, tn), lambda i, j: (i, j))

    if has_res:
        args = [cols, w_eff, pad_rows(residual), shift]
        in_specs = [cols_spec, w_spec, out_spec, sh_spec]
        kernel = _matmul_add_res_relu_kernel
        res_bytes = Mpad * Npad * 2
    else:
        args = [cols, w_eff, shift]
        in_specs = [cols_spec, w_spec, sh_spec]
        kernel = functools.partial(_matmul_bias_kernel, relu=relu)
        res_bytes = 0

    # Weights are fetched once when Ntiles == 1 (block index constant across the
    # grid), otherwise re-fetched once per M tile.
    w_reads = 1 if ntiles == 1 else mtiles
    cost = pl.CostEstimate(
        flops=2 * Mpad * K * Npad,
        transcendentals=0,
        bytes_accessed=(Mpad * K * 2              # cols (bf16)
                        + w_reads * K * Npad * 2  # weights (bf16)
                        + Npad * 4                # shift (f32)
                        + Mpad * Npad * 2         # output (bf16)
                        + res_bytes))

    return pl.pallas_call(
        kernel,
        grid=grid,
        in_specs=in_specs,
        out_specs=out_spec,
        out_shape=jax.ShapeDtypeStruct((Mpad, Npad), jnp.bfloat16),
        compiler_params=pltpu.CompilerParams(
            dimension_semantics=("parallel", "parallel"),
            vmem_limit_bytes=_vmem_limit(tm, tn, K, has_res=has_res, budget=budget)),
        cost_estimate=cost,
    )(*args)


# ----------------------------- JAX glue ------------------------------------ #

def _im2col(x_nhwc, ksize, stride, pad):
    """Extract conv patches -> (B*OH*OW, k*k*C), patch order (kh, kw, ci)."""
    B, H, W, C = x_nhwc.shape
    xp = jnp.pad(x_nhwc, ((0, 0), (pad, pad), (pad, pad), (0, 0)))
    OH = (H + 2 * pad - ksize) // stride + 1
    OW = (W + 2 * pad - ksize) // stride + 1
    patches = []
    for kh in range(ksize):
        for kw in range(ksize):
            sl = xp[:, kh:kh + stride * (OH - 1) + 1:stride,
                       kw:kw + stride * (OW - 1) + 1:stride, :]
            patches.append(sl)
    cols = jnp.concatenate(patches, axis=-1)  # (B, OH, OW, k*k*C)
    return cols.reshape(B * OH * OW, ksize * ksize * C), OH, OW


def _bn_affine(bn, eps=1e-5):
    scale = bn['gamma'] / jnp.sqrt(bn['var'] + eps)
    shift = bn['beta'] - bn['mean'] * scale
    return scale, shift


def init_bottleneck_params(key, in_ch, out_ch):
    keys = jax.random.split(key, 9)

    def conv_w(k, kh, kw, ci, co):
        return 0.1 * jax.random.normal(k, (kh, kw, ci, co), jnp.float32)  # HWIO

    def bn(k):
        k1, k2, k3, k4 = jax.random.split(k, 4)
        return dict(
            gamma=1.0 + 0.1 * jax.random.normal(k1, (out_ch,), jnp.float32),
            beta=0.1 * jax.random.normal(k2, (out_ch,), jnp.float32),
            mean=0.1 * jax.random.normal(k3, (out_ch,), jnp.float32),
            var=jax.random.uniform(k4, (out_ch,), jnp.float32, 0.5, 1.5),
        )

    params = dict(
        w1=conv_w(keys[0], 3, 3, in_ch, out_ch),
        b1=0.1 * jax.random.normal(keys[1], (out_ch,), jnp.float32),
        bn1=bn(keys[2]),
        w2=conv_w(keys[3], 3, 3, out_ch, out_ch),
        b2=0.1 * jax.random.normal(keys[4], (out_ch,), jnp.float32),
        bn2=bn(keys[5]),
    )
    if in_ch != out_ch:
        params['ws'] = conv_w(keys[6], 1, 1, in_ch, out_ch)
        params['bs'] = 0.1 * jax.random.normal(keys[7], (out_ch,), jnp.float32)
        params['bns'] = bn(keys[8])
    return params


def bottleneck_forward(params, x_nchw, stride):
    x = jnp.transpose(x_nchw, (0, 2, 3, 1)).astype(jnp.float32)  # NCHW -> NHWC
    B, H, W, Cin = x.shape
    Cout = params['w1'].shape[-1]
    Npad = _round_up(Cout, 128)       # lane-dense output channels

    x_bf = x.astype(jnp.bfloat16)

    # ---- conv1 (3x3, stride, pad=1) + bn1 + relu ----
    cols1, OH, OW = _im2col(x_bf, 3, stride, 1)           # bf16 im2col rows
    M = B * OH * OW
    s1, sh1 = _bn_affine(params['bn1'])
    w1_eff = _pad_n((params['w1'].reshape(9 * Cin, Cout) * s1).astype(jnp.bfloat16), Npad)
    sh1_eff = _pad_n((params['b1'] * s1 + sh1).reshape(1, Cout).astype(jnp.float32), Npad)
    out1 = _fused_matmul(cols1, w1_eff, sh1_eff, relu=True)        # bf16 (Mpad, Npad)
    out1_img = out1[:M, :Cout].reshape(B, OH, OW, Cout)            # stays bf16

    # ---- conv2 (3x3, stride=1, pad=1) + bn2 + shortcut + relu (fully fused) ----
    cols2, _, _ = _im2col(out1_img, 3, 1, 1)                       # (M, 9*Cout) bf16
    s2, sh2 = _bn_affine(params['bn2'])
    w2_mat = params['w2'].reshape(9 * Cout, Cout) * s2
    sh2_eff = (params['b2'] * s2 + sh2).reshape(1, Cout)

    # shortcut input rows (strided 1x1 sampling of x, matches conv1 geometry)
    xs = x_bf[:, ::stride, ::stride, :].reshape(M, Cin)

    if 'ws' in params:
        # Fold the 1x1 shortcut into the contraction: xs becomes a 10th "patch"
        # and Ws stacks under W2, so one matmul covers conv2 + shortcut.
        ss, shs = _bn_affine(params['bns'])
        ws_mat = params['ws'].reshape(Cin, Cout) * ss
        cols2_full = jnp.concatenate([cols2, xs], axis=-1)          # (M, 9*Cout+Cin)
        w_comb = _pad_n(jnp.concatenate([w2_mat, ws_mat], axis=0).astype(jnp.bfloat16),
                        Npad)
        sh_comb = _pad_n((sh2_eff + (params['bs'] * ss + shs).reshape(1, Cout))
                         .astype(jnp.float32), Npad)
        out = _fused_matmul(cols2_full, w_comb, sh_comb, relu=True)
    else:
        # identity shortcut (PyTorch semantics imply stride == 1 here)
        w2_eff = _pad_n(w2_mat.astype(jnp.bfloat16), Npad)
        res = _pad_n(xs, Npad)
        out = _fused_matmul(cols2, w2_eff,
                            _pad_n(sh2_eff.astype(jnp.float32), Npad),
                            relu=True, residual=res)

    out = out[:M, :Cout].astype(jnp.float32).reshape(B, OH, OW, Cout)
    return jnp.transpose(out, (0, 3, 1, 2))  # NHWC -> NCHW


# ----------------------------- reference & main ----------------------------- #

def _reference_forward(params, x_nchw, stride):
    x = jnp.transpose(x_nchw, (0, 2, 3, 1)).astype(jnp.float32)

    def conv(inp, w, b, s, pad):
        y = jax.lax.conv_general_dilated(
            inp, w, window_strides=(s, s), padding=((pad, pad), (pad, pad)),
            dimension_numbers=('NHWC', 'HWIO', 'NHWC'))
        return y + b

    def bn(y, p):
        s, sh = _bn_affine(p)
        return y * s + sh

    out = jax.nn.relu(bn(conv(x, params['w1'], params['b1'], stride, 1), params['bn1']))
    out = bn(conv(out, params['w2'], params['b2'], 1, 1), params['bn2'])
    if 'ws' in params:
        sc = bn(conv(x, params['ws'], params['bs'], stride, 0), params['bns'])
    else:
        sc = x[:, ::stride, ::stride, :]
    out = jax.nn.relu(out + sc)
    return jnp.transpose(out, (0, 3, 1, 2))


if __name__ == "__main__":
    key = jax.random.PRNGKey(0)
    k_x, k_p = jax.random.split(key)

    in_ch, out_ch, stride = 4, 8, 2
    x = jax.random.normal(k_x, (2, in_ch, 16, 16), jnp.float32)  # NCHW, like PyTorch
    params = init_bottleneck_params(k_p, in_ch, out_ch)

    fwd = jax.jit(functools.partial(bottleneck_forward, stride=stride))
    out = jax.block_until_ready(fwd(params, x))

    ref = _reference_forward(params, x, stride)
    assert out.shape == ref.shape == (2, out_ch, 8, 8), out.shape
    # bf16 operands + bf16 stored activations / f32 accumulation vs pure-f32 ref
    assert bool(jnp.allclose(out, ref, atol=5e-2, rtol=3e-2)), "mismatch vs reference"

    print("KERNEL_OK")
</pallas_src>

<mosaic_0001>
module attributes {stable_mosaic.version = 11 : i64} {
  func.func @_matmul_bias_kernel(%arg0: i32, %arg1: i32, %arg2: memref<64x36xbf16, #tpu.memory_space<vmem>>, %arg3: memref<36x128xbf16, #tpu.memory_space<vmem>>, %arg4: memref<1x128xf32, #tpu.memory_space<vmem>>, %arg5: memref<64x128xbf16, #tpu.memory_space<vmem>>) attributes {dimension_semantics = [#tpu.dimension_semantics<parallel>, #tpu.dimension_semantics<parallel>], iteration_bounds = array<i64: 2, 1>, scalar_prefetch = 0 : i64, scratch_operands = 0 : i64, tpu.core_type = #tpu.core_type<tc>, window_params = [{transform_indices = @transform_0, window_bounds = array<i64: 64, 36>}, {transform_indices = @transform_1, window_bounds = array<i64: 36, 128>}, {transform_indices = @transform_2, window_bounds = array<i64: 1, 128>}, {transform_indices = @transform_3, window_bounds = array<i64: 64, 128>}]} {
    %c0 = arith.constant 0 : index
    %c0_0 = arith.constant 0 : index
    %0 = vector.load %arg2[%c0, %c0_0] : memref<64x36xbf16, #tpu.memory_space<vmem>>, vector<64x36xbf16>
    %c0_1 = arith.constant 0 : index
    %c0_2 = arith.constant 0 : index
    %1 = vector.load %arg3[%c0_1, %c0_2] : memref<36x128xbf16, #tpu.memory_space<vmem>>, vector<36x128xbf16>
    %cst = arith.constant dense<0.000000e+00> : vector<64x128xf32>
    %2 = tpu.matmul %0, %1, %cst {dimension_numbers = #tpu.dot_dimension_numbers<[1], [0], [0], [1], [0, 0, 1, 1], [], []>} : vector<64x36xbf16>, vector<36x128xbf16>, vector<64x128xf32> -> vector<64x128xf32>
    %c0_3 = arith.constant 0 : index
    %c0_4 = arith.constant 0 : index
    %3 = vector.load %arg4[%c0_3, %c0_4] : memref<1x128xf32, #tpu.memory_space<vmem>>, vector<1x128xf32>
    %4 = vector.broadcast %3 : vector<1x128xf32> to vector<64x128xf32>
    %5 = arith.addf %2, %4 : vector<64x128xf32>
    %cst_5 = arith.constant 0.000000e+00 : f32
    %6 = vector.broadcast %cst_5 : f32 to vector<64x128xf32>
    %7 = arith.maximumf %5, %6 : vector<64x128xf32>
    %8 = arith.truncf %7 : vector<64x128xf32> to vector<64x128xbf16>
    %c0_6 = arith.constant 0 : index
    %c0_7 = arith.constant 0 : index
    %9 = vector.load %arg5[%c0_6, %c0_7] : memref<64x128xbf16, #tpu.memory_space<vmem>>, vector<64x128xbf16>
    tpu.vector_store %arg5[%c0_6, %c0_7], %8 {strides = array<i32>} : memref<64x128xbf16, #tpu.memory_space<vmem>>, vector<64x128xbf16>,
    return
  }
  func.func @transform_0(%arg0: i32, %arg1: i32) -> (i32, i32) {
    %c0_i32 = arith.constant 0 : i32
    %c0_i32_0 = arith.constant 0 : i32
    return %arg0, %c0_i32 : i32, i32
  }
  func.func @transform_1(%arg0: i32, %arg1: i32) -> (i32, i32) {
    %c0_i32 = arith.constant 0 : i32
    %c0_i32_0 = arith.constant 0 : i32
    return %c0_i32, %arg1 : i32, i32
  }
  func.func @transform_2(%arg0: i32, %arg1: i32) -> (i32, i32) {
    %c0_i32 = arith.constant 0 : i32
    %c0_i32_0 = arith.constant 0 : i32
    return %c0_i32, %arg1 : i32, i32
  }
  func.func @transform_3(%arg0: i32, %arg1: i32) -> (i32, i32) {
    %c0_i32 = arith.constant 0 : i32
    return %arg0, %arg1 : i32, i32
  }
}

module attributes {stable_mosaic.version = 11 : i64} {
  func.func @_matmul_bias_kernel(%arg0: i32, %arg1: i32, %arg2: memref<64x76xbf16, #tpu.memory_space<vmem>>, %arg3: memref<76x128xbf16, #tpu.memory_space<vmem>>, %arg4: memref<1x128xf32, #tpu.memory_space<vmem>>, %arg5: memref<64x128xbf16, #tpu.memory_space<vmem>>) attributes {dimension_semantics = [#tpu.dimension_semantics<parallel>, #tpu.dimension_semantics<parallel>], iteration_bounds = array<i64: 2, 1>, scalar_prefetch = 0 : i64, scratch_operands = 0 : i64, tpu.core_type = #tpu.core_type<tc>, window_params = [{transform_indices = @transform_0, window_bounds = array<i64: 64, 76>}, {transform_indices = @transform_1, window_bounds = array<i64: 76, 128>}, {transform_indices = @transform_2, window_bounds = array<i64: 1, 128>}, {transform_indices = @transform_3, window_bounds = array<i64: 64, 128>}]} {
    %c0 = arith.constant 0 : index
    %c0_0 = arith.constant 0 : index
    %0 = vector.load %arg2[%c0, %c0_0] : memref<64x76xbf16, #tpu.memory_space<vmem>>, vector<64x76xbf16>
    %c0_1 = arith.constant 0 : index
    %c0_2 = arith.constant 0 : index
    %1 = vector.load %arg3[%c0_1, %c0_2] : memref<76x128xbf16, #tpu.memory_space<vmem>>, vector<76x128xbf16>
    %cst = arith.constant dense<0.000000e+00> : vector<64x128xf32>
    %2 = tpu.matmul %0, %1, %cst {dimension_numbers = #tpu.dot_dimension_numbers<[1], [0], [0], [1], [0, 0, 1, 1], [], []>} : vector<64x76xbf16>, vector<76x128xbf16>, vector<64x128xf32> -> vector<64x128xf32>
    %c0_3 = arith.constant 0 : index
    %c0_4 = arith.constant 0 : index
    %3 = vector.load %arg4[%c0_3, %c0_4] : memref<1x128xf32, #tpu.memory_space<vmem>>, vector<1x128xf32>
    %4 = vector.broadcast %3 : vector<1x128xf32> to vector<64x128xf32>
    %5 = arith.addf %2, %4 : vector<64x128xf32>
    %cst_5 = arith.constant 0.000000e+00 : f32
    %6 = vector.broadcast %cst_5 : f32 to vector<64x128xf32>
    %7 = arith.maximumf %5, %6 : vector<64x128xf32>
    %8 = arith.truncf %7 : vector<64x128xf32> to vector<64x128xbf16>
    %c0_6 = arith.constant 0 : index
    %c0_7 = arith.constant 0 : index
    %9 = vector.load %arg5[%c0_6, %c0_7] : memref<64x128xbf16, #tpu.memory_space<vmem>>, vector<64x128xbf16>
    tpu.vector_store %arg5[%c0_6, %c0_7], %8 {strides = array<i32>} : memref<64x128xbf16, #tpu.memory_space<vmem>>, vector<64x128xbf16>,
    return
  }
  func.func @transform_0(%arg0: i32, %arg1: i32) -> (i32, i32) {
    %c0_i32 = arith.constant 0 : i32
    %c0_i32_0 = arith.constant 0 : i32
    return %arg0, %c0_i32 : i32, i32
  }
  func.func @transform_1(%arg0: i32, %arg1: i32) -> (i32, i32) {
    %c0_i32 = arith.constant 0 : i32
    %c0_i32_0 = arith.constant 0 : i32
    return %c0_i32, %arg1 : i32, i32
  }
  func.func @transform_2(%arg0: i32, %arg1: i32) -> (i32, i32) {
    %c0_i32 = arith.constant 0 : i32
    %c0_i32_0 = arith.constant 0 : i32
    return %c0_i32, %arg1 : i32, i32
  }
  func.func @transform_3(%arg0: i32, %arg1: i32) -> (i32, i32) {
    %c0_i32 = arith.constant 0 : i32
    return %arg0, %arg1 : i32, i32
  }
}

</mosaic_0001>

<bundles_post_ra>
// kernel: bottleneck_forward.2
= control target key start
LH: loop header
LB: loop body
LE: loop exit
PB: predicated region body
PF: predicated region fallthrough
CT: control target
= control target key end

     0   :  { %s598_s12 = smov 0   ;;  %s600_s13 = smov 0   ;;  %s650_s0 = inlined_call_operand.vmem [shape: bf16[128,36], index: 0, kind: input, shape index: {}]   ;;  %s651_s1 = inlined_call_operand.vmem [shape: bf16[36,128], index: 1, kind: input, shape index: {}]   ;;  %s652_s2 = inlined_call_operand.vmem [shape: f32[1,128], index: 2, kind: input, shape index: {}]   ;;  %s653_s3 = inlined_call_operand.vmem [shape: bf16[128,128], index: 3, kind: output, shape index: {}]  }
   0x1   :  { %s602_s14 = smov 0  }
   0x2 LB: > { %s25_s15 = sadd.s32 1, %s572_s13  ;;  %p456_p0 = scmp.ge.s32.totalorder %s576_s14, 1  ;;  %s576_s14 = sphi %s602_s14, %s13_s14   ;;  %s572_s13 = sphi %s600_s13, %s655_s13   ;;  %s568_s12 = sphi %s598_s12, %s654_s12  }
   0x3   : > { %p27_p1 = scmp.ge.s32.totalorder %s25_s15, 2  ;;  %p169_p2 = scmp.lt.s32.totalorder %s576_s14, 3 }
   0x5   : > { %s657_s15 = smov (%p27_p1, %s25_s15), 0  ;;  %p170_p3 = pnand %p456_p0, %p169_p2 }
   0x6   : > { %s457_s18 = sshll.u32 (!%p170_p3), %s568_s12, 3 }
   0x7   : > { %173 = sbr.rel (%p170_p3) target bundleno = 178 (0xb2), region = 32  ;;  %p204_p4 = scmp.lt.s32.totalorder (!%p170_p3), %s457_s18, 15 }
   0xc   : > { %v238_v0 = vld [vmem:[%s651_s1 + $0x10] sm:$0x3]  ;;  %vm291_vm0 = vcmask 1041408   ;;  %s659_s18 = smov (!%p204_p4, %s457_s18), 15  ;;  %v496_v4 = vld [vmem:[%s651_s1 + $0x8] sm:$0xff]  ;;  %v495_v5 = vld [vmem:[%s651_s1] sm:$0xff] }
   0xd   : > { %v272_v1 = vunpack.c.l.b16 %v238_v0  ;;  %s458_s21 = sshll.u32 %s659_s18, 2  ;;  %vm278_vm1 = vcmask 293888   ;;  %v553_v12 = vld [vmem:[%s652_s2] ss:$0 sm:$0xff] }
   0xe   : > { %s207_s26 = scalar_lea.vmem %s650_s0, %s458_s21  ;;  %s223_s4 = scalar_lea.vmem %s653_s3, %s458_s21 }
   0xf   : > { %v275_v2 = vpack.c.b16 %v272_v1, %v272_v1  ;;  %v491_v6 = vld [vmem:[%s207_s26] sm:$0xff]  ;;  %v492_v7 = vld [vmem:[%s207_s26 + $0x8] sm:$0xff]  ;;  %v493_v8 = vld [vmem:[%s207_s26 + $0x10] sm:$0xff] }
  0x10   : > { %v494_v9 = vld [vmem:[%s207_s26 + $0x18] sm:$0xff] }
  0x11   : > { %v293_v3 = vsel %vm291_vm0, %v275_v2, 0 }
  0x12   : > { %300 = vmatpush.bf16.msra.mxu0 %v293_v3  ;;  %520 = vmatpush.bf16.msra.mxu1 %v293_v3 }
  0x13   : > { %521 = vmatpush.bf16.msra.mxu2 %v293_v3  ;;  %522 = vmatpush.bf16.msra.mxu3 %v293_v3 }
  0x16   : > { %301 = vmatpush.bf16.msra.mxu0 %v496_v4  ;;  %523 = vmatpush.bf16.msra.mxu1 %v496_v4 }
  0x17   : > { %524 = vmatpush.bf16.msra.mxu2 %v496_v4  ;;  %525 = vmatpush.bf16.msra.mxu3 %v496_v4 }
  0x1a   : > { %302 = vmatpush.bf16.msra.mxu0 %v495_v5  ;;  %526 = vmatpush.bf16.msra.mxu1 %v495_v5 }
  0x1b   : > { %527 = vmatpush.bf16.msra.mxu2 %v495_v5  ;;  %528 = vmatpush.bf16.msra.mxu3 %v495_v5 }
  0x1d   : > { %485 = vmatmul.msk.bf16.vlgmr.msra.gmra.mxu0 %vm278_vm1, %v491_v6  ;;  %486 = vmatmul.msk.bf16.vlgmr.msra.gmra.mxu1 %vm278_vm1, %v492_v7 }
  0x1e   : > { %487 = vmatmul.msk.bf16.vlgmr.msra.gmra.mxu2 %vm278_vm1, %v493_v8  ;;  %488 = vmatmul.msk.bf16.vlgmr.msra.gmra.mxu3 %vm278_vm1, %v494_v9 }
  0x9a   : > { %v304_v10 = vpop.f32.mrf.mxu0  ;;  %v309_v11 = vpop.f32.mrf.mxu1 }
  0x9b   : > { %v305_v13 = vadd.f32 %v553_v12, %v304_v10  ;;  %v310_v14 = vadd.f32 %v553_v12, %v309_v11 }
  0x9d   : > { %v324_v21 = vmax.f32 %v305_v13, 0.0  ;;  %v326_v22 = vmax.f32 %v310_v14, 0.0 }
  0xa1   : > { %v314_v15 = vpop.f32.mrf.mxu2  ;;  %v319_v16 = vpop.f32.mrf.mxu3 }
  0xa2   : > { %v306_v17 = vpop.f32.mrf.mxu0  ;;  %v311_v18 = vpop.f32.mrf.mxu1  ;;  %v315_v27 = vadd.f32 %v553_v12, %v314_v15  ;;  %v320_v28 = vadd.f32 %v553_v12, %v319_v16 }
  0xa3   : > { %v307_v19 = vadd.f32 %v553_v12, %v306_v17  ;;  %v312_v20 = vadd.f32 %v553_v12, %v311_v18 }
  0xa4   : > { %v328_v33 = vmax.f32 %v315_v27, 0.0  ;;  %v330_v34 = vmax.f32 %v320_v28, 0.0 }
  0xa5   : > { %v325_v23 = vmax.f32 %v307_v19, 0.0  ;;  %v327_v24 = vmax.f32 %v312_v20, 0.0 }
  0xa7   : > { %v500_v25 = vpack.c.bf16 %v325_v23, %v324_v21  ;;  %v505_v26 = vpack.c.bf16 %v327_v24, %v326_v22 }
  0xa9   : > { %501 = vst [vmem:[%s223_s4] sm:$0xff] %v500_v25   ;;  %v316_v29 = vpop.f32.mrf.mxu2  ;;  %v321_v30 = vpop.f32.mrf.mxu3 }
  0xaa   : > { %517 = vst [vmem:[%s223_s4 + $0x8] sm:$0xff] %v505_v26   ;;  %v317_v31 = vadd.f32 %v553_v12, %v316_v29  ;;  %v322_v32 = vadd.f32 %v553_v12, %v321_v30 }
  0xac   : > { %v329_v35 = vmax.f32 %v317_v31, 0.0  ;;  %v331_v36 = vmax.f32 %v322_v32, 0.0 }
  0xae   : > { %v510_v37 = vpack.c.bf16 %v329_v35, %v328_v33  ;;  %v515_v38 = vpack.c.bf16 %v331_v36, %v330_v34 }
  0xb0   : > { %518 = vst [vmem:[%s223_s4 + $0x10] sm:$0xff] %v510_v37  }
  0xb1   : > { %519 = vst [vmem:[%s223_s4 + $0x18] sm:$0xff] %v515_v38  }
  0xb2 PF: > { %s13_s14 = sadd.s32 1, %s576_s14   ;;  %s654_s12 = smov %s572_s13 }
  0xb3   : > { %p10_p5 = scmp.ge.s32.totalorder %s13_s14, 4   ;;  %s655_s13 = smov %s657_s15 }
  0xb5   :  { %12 = sbr.rel (!%p10_p5) target bundleno = 2 (0x2), region = 68 }

// kernel: bottleneck_forward.3
= control target key start
LH: loop header
LB: loop body
LE: loop exit
PB: predicated region body
PF: predicated region fallthrough
CT: control target
= control target key end

     0   :  { %s638_s12 = smov 0   ;;  %s640_s13 = smov 0   ;;  %s699_s0 = inlined_call_operand.vmem [shape: bf16[128,76], index: 0, kind: input, shape index: {}]   ;;  %s700_s1 = inlined_call_operand.vmem [shape: bf16[76,128], index: 1, kind: input, shape index: {}]   ;;  %s701_s2 = inlined_call_operand.vmem [shape: f32[1,128], index: 2, kind: input, shape index: {}]   ;;  %s702_s3 = inlined_call_operand.vmem [shape: bf16[128,128], index: 3, kind: output, shape index: {}]  }
   0x1   :  { %s642_s14 = smov 0  }
   0x2 LB: > { %s25_s15 = sadd.s32 1, %s612_s13  ;;  %p475_p0 = scmp.ge.s32.totalorder %s616_s14, 1  ;;  %s616_s14 = sphi %s642_s14, %s13_s14   ;;  %s612_s13 = sphi %s640_s13, %s704_s13   ;;  %s608_s12 = sphi %s638_s12, %s703_s12  }
   0x3   : > { %p27_p1 = scmp.ge.s32.totalorder %s25_s15, 2  ;;  %p169_p2 = scmp.lt.s32.totalorder %s616_s14, 3 }
   0x5   : > { %s706_s15 = smov (%p27_p1, %s25_s15), 0  ;;  %p170_p3 = pnand %p475_p0, %p169_p2 }
   0x6   : > { %s476_s20 = sshll.u32 (!%p170_p3), %s608_s12, 3 }
   0x7   : > { %173 = sbr.rel (%p170_p3) target bundleno = 184 (0xb8), region = 32  ;;  %p204_p4 = scmp.lt.s32.totalorder (!%p170_p3), %s476_s20, 15 }
   0xc   : > { %v514_v0 = vld [vmem:[%s700_s1 + $0x20] sm:$0xf]  ;;  %v530_v1 = vld [vmem:[%s700_s1 + $0x20] sm:$0x30]  ;;  %vm310_vm0 = vcmask 1045504   ;;  %v529_v4 = vld [vmem:[%s700_s1 + $0x18] sm:$0xff] }
   0xd   : > { %v515_v2 = vor.u32 %v530_v1, %v514_v0  ;;  %v528_v5 = vld [vmem:[%s700_s1 + $0x10] sm:$0xff]  ;;  %s708_s20 = smov (!%p204_p4, %s476_s20), 15  ;;  %v527_v6 = vld [vmem:[%s700_s1 + $0x8] sm:$0xff]  ;;  %v526_v7 = vld [vmem:[%s700_s1] sm:$0xff]  ;;  %vm297_vm1 = vcmask 621568  }
   0xe   : > { %s477_s27 = sshll.u32 %s708_s20, 2  ;;  %v593_v14 = vld [vmem:[%s701_s2] ss:$0 sm:$0xff] }
   0xf   : > { %v312_v3 = vsel %vm310_vm0, %v515_v2, 0  ;;  %s207_s5 = scalar_lea.vmem %s699_s0, %s477_s27  ;;  %s223_s10 = scalar_lea.vmem %s702_s3, %s477_s27 }
  0x10   : > { %317 = vmatpush.bf16.msra.mxu0 %v312_v3  ;;  %554 = vmatpush.bf16.msra.mxu1 %v312_v3  ;;  %v522_v8 = vld [vmem:[%s207_s5] sm:$0xff]  ;;  %v523_v9 = vld [vmem:[%s207_s5 + $0x8] sm:$0xff]  ;;  %v524_v10 = vld [vmem:[%s207_s5 + $0x10] sm:$0xff] }
  0x11   : > { %555 = vmatpush.bf16.msra.mxu2 %v312_v3  ;;  %556 = vmatpush.bf16.msra.mxu3 %v312_v3  ;;  %v525_v11 = vld [vmem:[%s207_s5 + $0x18] sm:$0xff] }
  0x14   : > { %318 = vmatpush.bf16.msra.mxu0 %v529_v4  ;;  %557 = vmatpush.bf16.msra.mxu1 %v529_v4 }
  0x15   : > { %558 = vmatpush.bf16.msra.mxu2 %v529_v4  ;;  %559 = vmatpush.bf16.msra.mxu3 %v529_v4 }
  0x18   : > { %319 = vmatpush.bf16.msra.mxu0 %v528_v5  ;;  %560 = vmatpush.bf16.msra.mxu1 %v528_v5 }
  0x19   : > { %561 = vmatpush.bf16.msra.mxu2 %v528_v5  ;;  %562 = vmatpush.bf16.msra.mxu3 %v528_v5 }
  0x1c   : > { %320 = vmatpush.bf16.msra.mxu0 %v527_v6  ;;  %563 = vmatpush.bf16.msra.mxu1 %v527_v6 }
  0x1d   : > { %564 = vmatpush.bf16.msra.mxu2 %v527_v6  ;;  %565 = vmatpush.bf16.msra.mxu3 %v527_v6 }
  0x20   : > { %321 = vmatpush.bf16.msra.mxu0 %v526_v7  ;;  %566 = vmatpush.bf16.msra.mxu1 %v526_v7 }
  0x21   : > { %567 = vmatpush.bf16.msra.mxu2 %v526_v7  ;;  %568 = vmatpush.bf16.msra.mxu3 %v526_v7 }
  0x23   : > { %516 = vmatmul.msk.bf16.vlgmr.msra.gmra.mxu0 %vm297_vm1, %v522_v8  ;;  %517 = vmatmul.msk.bf16.vlgmr.msra.gmra.mxu1 %vm297_vm1, %v523_v9 }
  0x24   : > { %518 = vmatmul.msk.bf16.vlgmr.msra.gmra.mxu2 %vm297_vm1, %v524_v10  ;;  %519 = vmatmul.msk.bf16.vlgmr.msra.gmra.mxu3 %vm297_vm1, %v525_v11 }
  0xa0   : > { %v323_v12 = vpop.f32.mrf.mxu0  ;;  %v328_v13 = vpop.f32.mrf.mxu1 }
  0xa1   : > { %v324_v15 = vadd.f32 %v593_v14, %v323_v12  ;;  %v329_v16 = vadd.f32 %v593_v14, %v328_v13 }
  0xa3   : > { %v343_v23 = vmax.f32 %v324_v15, 0.0  ;;  %v345_v24 = vmax.f32 %v329_v16, 0.0 }
  0xa7   : > { %v333_v17 = vpop.f32.mrf.mxu2  ;;  %v338_v18 = vpop.f32.mrf.mxu3 }
  0xa8   : > { %v325_v19 = vpop.f32.mrf.mxu0  ;;  %v330_v20 = vpop.f32.mrf.mxu1  ;;  %v334_v29 = vadd.f32 %v593_v14, %v333_v17  ;;  %v339_v30 = vadd.f32 %v593_v14, %v338_v18 }
  0xa9   : > { %v326_v21 = vadd.f32 %v593_v14, %v325_v19  ;;  %v331_v22 = vadd.f32 %v593_v14, %v330_v20 }
  0xaa   : > { %v347_v35 = vmax.f32 %v334_v29, 0.0  ;;  %v349_v36 = vmax.f32 %v339_v30, 0.0 }
  0xab   : > { %v344_v25 = vmax.f32 %v326_v21, 0.0  ;;  %v346_v26 = vmax.f32 %v331_v22, 0.0 }
  0xad   : > { %v534_v27 = vpack.c.bf16 %v344_v25, %v343_v23  ;;  %v539_v28 = vpack.c.bf16 %v346_v26, %v345_v24 }
  0xaf   : > { %535 = vst [vmem:[%s223_s10] sm:$0xff] %v534_v27   ;;  %v335_v31 = vpop.f32.mrf.mxu2  ;;  %v340_v32 = vpop.f32.mrf.mxu3 }
  0xb0   : > { %551 = vst [vmem:[%s223_s10 + $0x8] sm:$0xff] %v539_v28   ;;  %v336_v33 = vadd.f32 %v593_v14, %v335_v31  ;;  %v341_v34 = vadd.f32 %v593_v14, %v340_v32 }
  0xb2   : > { %v348_v37 = vmax.f32 %v336_v33, 0.0  ;;  %v350_v38 = vmax.f32 %v341_v34, 0.0 }
  0xb4   : > { %v544_v39 = vpack.c.bf16 %v348_v37, %v347_v35  ;;  %v549_v40 = vpack.c.bf16 %v350_v38, %v349_v36 }
  0xb6   : > { %552 = vst [vmem:[%s223_s10 + $0x10] sm:$0xff] %v544_v39  }
  0xb7   : > { %553 = vst [vmem:[%s223_s10 + $0x18] sm:$0xff] %v549_v40  }
  0xb8 PF: > { %s13_s14 = sadd.s32 1, %s616_s14   ;;  %s703_s12 = smov %s612_s13 }
  0xb9   : > { %p10_p5 = scmp.ge.s32.totalorder %s13_s14, 4   ;;  %s704_s13 = smov %s706_s15 }
  0xbb   :  { %12 = sbr.rel (!%p10_p5) target bundleno = 2 (0x2), region = 68 }

</bundles_post_ra>
